<compile_context>
chip_gen: v6e
topology: v6e:2x2x1
jax: 0.10.0
libtpu: 0.0.40
codegen_flags: <defaults>
</compile_context>

<pallas_src>
import functools
import math

import numpy as np
import jax
import jax.numpy as jnp
from jax.experimental import pallas as pl
from jax.experimental.pallas import tpu as pltpu


_BINOMIAL = {1: [1.], 2: [1., 1.], 3: [1., 2., 1.], 4: [1., 3., 3., 1.],
             5: [1., 4., 6., 4., 1.], 6: [1., 5., 10., 10., 5., 1.],
             7: [1., 6., 15., 20., 15., 6., 1.]}


def make_filter(filt_size, channels):
    """Deterministic 2-D binomial blur filter, identical to the PyTorch buffer."""
    a = np.array(_BINOMIAL[filt_size], dtype=np.float64)
    f = a[:, None] * a[None, :]
    f = f / f.sum()
    return jnp.asarray(np.tile(f[None], (channels, 1, 1)), dtype=jnp.float32)


def _blur_downsample_kernel(*refs, taps, stride):
    """refs = (plane_0, ..., plane_{stride-1}, out).

    plane_b block: (1, cb, Hp, Wplane) -- columns b, b+stride, ... of padded x
    out block:     (1, cb, Hout, Wout)
    """
    *plane_refs, o_ref = refs
    k = len(taps)
    _, _, h_out, w_out = o_ref.shape

    # Pass 1 (vertical, row-reducing first): the stride-`stride` row windows
    # live on the sublane axis of each plane ref (plain strided loads).
    # Accumulate in f32; k is tiny -> static unroll.
    vert = []
    for p_ref in plane_refs:
        acc = taps[0] * p_ref[:, :, pl.ds(0, h_out, stride=stride), :].astype(jnp.float32)
        for di in range(1, k):
            acc = acc + taps[di] * (
                p_ref[:, :, pl.ds(di, h_out, stride=stride), :].astype(jnp.float32))
        vert.append(acc)

    # Pass 2 (horizontal): thanks to the wrapper-side column de-interleave the
    # stride-`stride` column windows become unit-stride lane reads of the
    # parity planes at small static offsets (0, 1, ...).
    out = None
    for dj in range(k):
        off = dj // stride
        term = taps[dj] * jax.lax.slice_in_dim(vert[dj % stride], off, off + w_out, axis=3)
        out = term if out is None else out + term
    o_ref[...] = out.astype(o_ref.dtype)


def _vmem_capacity_bytes():
    try:
        return int(pltpu.get_tpu_info().vmem_capacity_bytes)
    except Exception:
        return 64 * 1024 * 1024   # conservative (v7x-sized) fallback


def _pick_channel_block(N, C, step_bytes_per_c, budget_bytes, target_bytes=2 << 20):
    """Largest divisor of C whose per-step footprint fits the budget, preferring
    configurations that (a) keep >=2 parallel grid programs (dual-TC v7x) and
    (b) stay near ~2 MiB per step so grid-step overhead is amortized."""
    divisors = [d for d in range(1, C + 1) if C % d == 0]
    fits = [d for d in divisors if d * step_bytes_per_c <= budget_bytes] or [1]
    if N * C >= 2:
        pref = [d for d in fits if N * (C // d) >= 2] or fits
    else:
        pref = fits
    within_target = [d for d in pref if d * step_bytes_per_c <= target_bytes]
    return max(within_target) if within_target else min(pref)


def downsamp_forward(x, *, filt_size=3, stride=2, pad_type='reflect', pad_off=0):
    """Equivalent to: F.conv2d(reflect_pad(x), binomial_filt, stride=stride, groups=C)."""
    N, C, H, W = (int(d) for d in x.shape)
    pad_l = int(1.0 * (filt_size - 1) / 2) + pad_off
    pad_r = int(math.ceil(1.0 * (filt_size - 1) / 2)) + pad_off
    mode = {'reflect': 'reflect', 'refl': 'reflect',
            'repl': 'edge', 'replicate': 'edge', 'zero': 'constant'}[pad_type]

    if filt_size == 1:
        # Pure strided slicing path (no conv) -- no hot compute, stays in JAX.
        if pad_off == 0:
            return x[:, :, ::stride, ::stride]
        xp = jnp.pad(x, ((0, 0), (0, 0), (pad_l, pad_r), (pad_l, pad_r)), mode=mode)
        return xp[:, :, ::stride, ::stride]

    # Separable 1-D taps: the module's 2-D filter is the normalized outer
    # product a⊗a (identical for every channel), so taps = a / sum(a).
    a = np.asarray(_BINOMIAL[filt_size], dtype=np.float64)
    taps = tuple(float(t) for t in (a / a.sum()))
    k = filt_size

    # Wrapper-side layout glue (stays NCHW; no transposes, no channel pad):
    #   1) spatial reflect/edge/zero pad,
    #   2) de-interleave padded columns into `stride` parity planes so the
    #      horizontal stride-`stride` windows become unit-stride lane reads.
    # XLA fuses the pad into the strided-slice producers -> ~one relayout pass.
    xp = jnp.pad(x, ((0, 0), (0, 0), (pad_l, pad_r), (pad_l, pad_r)), mode=mode)
    Hp, Wp = int(xp.shape[2]), int(xp.shape[3])
    Hout = (Hp - k) // stride + 1
    Wout = (Wp - k) // stride + 1
    w_plane = Wout + (k - 1) // stride   # widest column offset any tap needs

    planes = []
    for b in range(stride):
        pb = xp[:, :, :, b::stride]
        cur = int(pb.shape[3])
        if cur < w_plane:
            pb = jnp.pad(pb, ((0, 0), (0, 0), (0, 0), (0, w_plane - cur)))
        elif cur > w_plane:
            pb = pb[:, :, :, :w_plane]
        planes.append(pb)

    # Chip-aware sizing: channel block + VMEM limit from the real block sizes.
    itemsize = int(jnp.dtype(x.dtype).itemsize)
    cap = _vmem_capacity_bytes()
    in_bytes_per_c = stride * Hp * w_plane * itemsize          # all planes, 1 channel
    out_bytes_per_c = Hout * Wout * itemsize
    tmp_bytes_per_c = stride * Hout * w_plane * 4               # f32 vertical intermediates
    step_bytes_per_c = 2 * in_bytes_per_c + 2 * out_bytes_per_c + tmp_bytes_per_c
    cb = _pick_channel_block(N, C, step_bytes_per_c, budget_bytes=int(0.4 * cap))
    c_tiles = C // cb
    vmem_limit = int(min(max(cb * step_bytes_per_c + (4 << 20), 16 << 20),
                         int(0.78 * cap)))

    cost = pl.CostEstimate(
        flops=int(2.0 * k * N * C * Hout * (stride * w_plane + Wout)),
        transcendentals=0,
        bytes_accessed=int(N * C * (stride * Hp * w_plane + Hout * Wout) * itemsize),
    )

    kernel = functools.partial(_blur_downsample_kernel, taps=taps, stride=stride)
    out = pl.pallas_call(
        kernel,
        out_shape=jax.ShapeDtypeStruct((N, C, Hout, Wout), x.dtype),
        grid=(N, c_tiles),
        in_specs=[pl.BlockSpec((1, cb, Hp, w_plane), lambda n, c: (n, c, 0, 0))
                  for _ in range(stride)],
        out_specs=pl.BlockSpec((1, cb, Hout, Wout), lambda n, c: (n, c, 0, 0)),
        compiler_params=pltpu.CompilerParams(
            dimension_semantics=("parallel", "parallel"),
            vmem_limit_bytes=vmem_limit,
        ),
        cost_estimate=cost,
    )(*planes)
    return out


if __name__ == "__main__":
    key = jax.random.PRNGKey(0)
    N, C, H, W = 2, 4, 16, 16
    filt_size, stride = 3, 2

    x = jax.random.normal(key, (N, C, H, W), dtype=jnp.float32)

    out = downsamp_forward(x, filt_size=filt_size, stride=stride, pad_type='reflect')
    out = jax.block_until_ready(out)
    assert out.shape == (N, C, H // stride, W // stride), out.shape

    # Reference: reflection-pad + depthwise (grouped) conv, identical to
    # F.conv2d(self.pad(inp), self.filt, stride=2, groups=C).
    filt = make_filter(filt_size, C)           # deterministic buffer, shape (C, 3, 3)
    xp_ref = jnp.pad(x, ((0, 0), (0, 0), (1, 1), (1, 1)), mode='reflect')
    w_ref = filt.reshape(C, 1, filt_size, filt_size)
    ref = jax.lax.conv_general_dilated(
        xp_ref, w_ref, window_strides=(stride, stride), padding='VALID',
        feature_group_count=C, dimension_numbers=('NCHW', 'OIHW', 'NCHW'))
    np.testing.assert_allclose(np.asarray(out), np.asarray(ref),
                               rtol=1e-5, atol=1e-5)

    print("KERNEL_OK")
</pallas_src>

<mosaic_0001>
module attributes {stable_mosaic.version = 11 : i64} {
  func.func @_blur_downsample_kernel(%arg0: i32, %arg1: i32, %arg2: memref<1x4x18x9xf32, #tpu.memory_space<vmem>>, %arg3: memref<1x4x18x9xf32, #tpu.memory_space<vmem>>, %arg4: memref<1x4x8x8xf32, #tpu.memory_space<vmem>>) attributes {dimension_semantics = [#tpu.dimension_semantics<parallel>, #tpu.dimension_semantics<parallel>], iteration_bounds = array<i64: 2, 1>, scalar_prefetch = 0 : i64, scratch_operands = 0 : i64, tpu.core_type = #tpu.core_type<tc>, window_params = [{transform_indices = @transform_0, window_bounds = array<i64: 1, 4, 18, 9>}, {transform_indices = @transform_1, window_bounds = array<i64: 1, 4, 18, 9>}, {transform_indices = @transform_2, window_bounds = array<i64: 1, 4, 8, 8>}]} {
    %c0 = arith.constant 0 : index
    %c0_0 = arith.constant 0 : index
    %c0_1 = arith.constant 0 : index
    %c0_2 = arith.constant 0 : index
    %0 = tpu.strided_load %arg2[%c0, %c0_0, %c0_1, %c0_2] {strides = array<i32: 1, 1, 2, 1>} : memref<1x4x18x9xf32, #tpu.memory_space<vmem>>, vector<1x4x8x9xf32>
    %cst = arith.constant 2.500000e-01 : f32
    %1 = vector.broadcast %cst : f32 to vector<1x4x8x9xf32>
    %2 = arith.mulf %1, %0 : vector<1x4x8x9xf32>
    %c0_3 = arith.constant 0 : index
    %c0_4 = arith.constant 0 : index
    %c1 = arith.constant 1 : index
    %c0_5 = arith.constant 0 : index
    %3 = tpu.strided_load %arg2[%c0_3, %c0_4, %c1, %c0_5] {strides = array<i32: 1, 1, 2, 1>} : memref<1x4x18x9xf32, #tpu.memory_space<vmem>>, vector<1x4x8x9xf32>
    %cst_6 = arith.constant 5.000000e-01 : f32
    %4 = vector.broadcast %cst_6 : f32 to vector<1x4x8x9xf32>
    %5 = arith.mulf %4, %3 : vector<1x4x8x9xf32>
    %6 = arith.addf %2, %5 : vector<1x4x8x9xf32>
    %c0_7 = arith.constant 0 : index
    %c0_8 = arith.constant 0 : index
    %c2 = arith.constant 2 : index
    %c0_9 = arith.constant 0 : index
    %7 = tpu.strided_load %arg2[%c0_7, %c0_8, %c2, %c0_9] {strides = array<i32: 1, 1, 2, 1>} : memref<1x4x18x9xf32, #tpu.memory_space<vmem>>, vector<1x4x8x9xf32>
    %cst_10 = arith.constant 2.500000e-01 : f32
    %8 = vector.broadcast %cst_10 : f32 to vector<1x4x8x9xf32>
    %9 = arith.mulf %8, %7 : vector<1x4x8x9xf32>
    %10 = arith.addf %6, %9 : vector<1x4x8x9xf32>
    %c0_11 = arith.constant 0 : index
    %c0_12 = arith.constant 0 : index
    %c0_13 = arith.constant 0 : index
    %c0_14 = arith.constant 0 : index
    %11 = tpu.strided_load %arg3[%c0_11, %c0_12, %c0_13, %c0_14] {strides = array<i32: 1, 1, 2, 1>} : memref<1x4x18x9xf32, #tpu.memory_space<vmem>>, vector<1x4x8x9xf32>
    %cst_15 = arith.constant 2.500000e-01 : f32
    %12 = vector.broadcast %cst_15 : f32 to vector<1x4x8x9xf32>
    %13 = arith.mulf %12, %11 : vector<1x4x8x9xf32>
    %c0_16 = arith.constant 0 : index
    %c0_17 = arith.constant 0 : index
    %c1_18 = arith.constant 1 : index
    %c0_19 = arith.constant 0 : index
    %14 = tpu.strided_load %arg3[%c0_16, %c0_17, %c1_18, %c0_19] {strides = array<i32: 1, 1, 2, 1>} : memref<1x4x18x9xf32, #tpu.memory_space<vmem>>, vector<1x4x8x9xf32>
    %cst_20 = arith.constant 5.000000e-01 : f32
    %15 = vector.broadcast %cst_20 : f32 to vector<1x4x8x9xf32>
    %16 = arith.mulf %15, %14 : vector<1x4x8x9xf32>
    %17 = arith.addf %13, %16 : vector<1x4x8x9xf32>
    %c0_21 = arith.constant 0 : index
    %c0_22 = arith.constant 0 : index
    %c2_23 = arith.constant 2 : index
    %c0_24 = arith.constant 0 : index
    %18 = tpu.strided_load %arg3[%c0_21, %c0_22, %c2_23, %c0_24] {strides = array<i32: 1, 1, 2, 1>} : memref<1x4x18x9xf32, #tpu.memory_space<vmem>>, vector<1x4x8x9xf32>
    %cst_25 = arith.constant 2.500000e-01 : f32
    %19 = vector.broadcast %cst_25 : f32 to vector<1x4x8x9xf32>
    %20 = arith.mulf %19, %18 : vector<1x4x8x9xf32>
    %21 = arith.addf %17, %20 : vector<1x4x8x9xf32>
    %22 = vector.extract_strided_slice %10 {offsets = [0, 0, 0, 0], sizes = [1, 4, 8, 8], strides = [1, 1, 1, 1]} : vector<1x4x8x9xf32> to vector<1x4x8x8xf32>
    %cst_26 = arith.constant 2.500000e-01 : f32
    %23 = vector.broadcast %cst_26 : f32 to vector<1x4x8x8xf32>
    %24 = arith.mulf %23, %22 : vector<1x4x8x8xf32>
    %25 = vector.extract_strided_slice %21 {offsets = [0, 0, 0, 0], sizes = [1, 4, 8, 8], strides = [1, 1, 1, 1]} : vector<1x4x8x9xf32> to vector<1x4x8x8xf32>
    %cst_27 = arith.constant 5.000000e-01 : f32
    %26 = vector.broadcast %cst_27 : f32 to vector<1x4x8x8xf32>
    %27 = arith.mulf %26, %25 : vector<1x4x8x8xf32>
    %28 = arith.addf %24, %27 : vector<1x4x8x8xf32>
    %29 = vector.extract_strided_slice %10 {offsets = [0, 0, 0, 1], sizes = [1, 4, 8, 8], strides = [1, 1, 1, 1]} : vector<1x4x8x9xf32> to vector<1x4x8x8xf32>
    %cst_28 = arith.constant 2.500000e-01 : f32
    %30 = vector.broadcast %cst_28 : f32 to vector<1x4x8x8xf32>
    %31 = arith.mulf %30, %29 : vector<1x4x8x8xf32>
    %32 = arith.addf %28, %31 : vector<1x4x8x8xf32>
    %c0_29 = arith.constant 0 : index
    %c0_30 = arith.constant 0 : index
    %c0_31 = arith.constant 0 : index
    %c0_32 = arith.constant 0 : index
    %33 = vector.load %arg4[%c0_29, %c0_30, %c0_31, %c0_32] : memref<1x4x8x8xf32, #tpu.memory_space<vmem>>, vector<1x4x8x8xf32>
    tpu.vector_store %arg4[%c0_29, %c0_30, %c0_31, %c0_32], %32 {strides = array<i32>} : memref<1x4x8x8xf32, #tpu.memory_space<vmem>>, vector<1x4x8x8xf32>,
    return
  }
  func.func @transform_0(%arg0: i32, %arg1: i32) -> (i32, i32, i32, i32) {
    %c0_i32 = arith.constant 0 : i32
    %c0_i32_0 = arith.constant 0 : i32
    %c0_i32_1 = arith.constant 0 : i32
    return %arg0, %arg1, %c0_i32, %c0_i32_0 : i32, i32, i32, i32
  }
  func.func @transform_1(%arg0: i32, %arg1: i32) -> (i32, i32, i32, i32) {
    %c0_i32 = arith.constant 0 : i32
    %c0_i32_0 = arith.constant 0 : i32
    %c0_i32_1 = arith.constant 0 : i32
    return %arg0, %arg1, %c0_i32, %c0_i32_0 : i32, i32, i32, i32
  }
  func.func @transform_2(%arg0: i32, %arg1: i32) -> (i32, i32, i32, i32) {
    %c0_i32 = arith.constant 0 : i32
    %c0_i32_0 = arith.constant 0 : i32
    %c0_i32_1 = arith.constant 0 : i32
    return %arg0, %arg1, %c0_i32, %c0_i32_0 : i32, i32, i32, i32
  }
}

</mosaic_0001>

<bundles_post_ra>
// kernel: tpu_custom_call.1
= control target key start
LH: loop header
LB: loop body
LE: loop exit
PB: predicated region body
PF: predicated region fallthrough
CT: control target
= control target key end

     0   :  { %7 = vsyncpa [#allocation3], 0  ;;  %s784_s0 = inlined_call_operand.vmem [shape: f32[2,4,18,9], index: 0, kind: input, shape index: {}]   ;;  %s785_s1 = inlined_call_operand.vmem [shape: f32[2,4,18,9], index: 1, kind: input, shape index: {}]   ;;  %s786_s2 = inlined_call_operand.hbm [shape: f32[2,4,8,8], index: 2, kind: output, shape index: {}]  }
   0x1   :  { %9 = vsyncpa [#allocation3 + $0x1], 0  ;;  %s649_s9 = smov 0   ;;  %s651_s10 = smov 0  }
   0x2   :  { %s653_s11 = smov 0   ;;  %s655_s12 = smov 0  }
   0x3   :  { %s657_s13 = smov 0   ;;  %s659_s14 = smov 0  }
   0x4 LB: > { %s457_s15 = sadd.s32 4294967295, %s628_s14   ;;  %s458_s16 = sadd.s32 4294967294, %s628_s14   ;;  %s628_s14 = sphi %s659_s14, %s15_s14   ;;  %s624_s13 = sphi %s657_s13, %s793_s13   ;;  %s620_s12 = sphi %s655_s12, %s792_s12   ;;  %s616_s11 = sphi %s653_s11, %s791_s11   ;;  %s612_s10 = sphi %s651_s10, %s790_s10   ;;  %s608_s9 = sphi %s649_s9, %s789_s9  }
   0x5   : > { %s27_s17 = sadd.s32 1, %s624_s13  ;;  %s92_s18 = sadd.s32 1, %s616_s11 }
   0x6   : > { %p29_p0 = scmp.ge.s32.totalorder %s27_s17, 2  ;;  %p102_p1 = scmp.ne.s32.totalorder %s616_s11, %s612_s10 }
   0x7   : > { %p103_p2 = scmp.eq.s32.totalorder %s457_s15, 1  ;;  %p108_p3 = scmp.ne.s32.totalorder %s612_s10, %s608_s9 }
   0x8   : > { %s795_s17 = smov (%p29_p0, %s27_s17), 0  ;;  %p109_p5 = scmp.eq.s32.totalorder %s458_s16, 1 }
   0x9   : > { %p689_p4 = por %p103_p2, %p102_p1  ;;  %s87_s20 = ssub.s32 %s624_s13, %s795_s17 }
   0xa   : > { %p461_p6 = scmp.ge.s32.totalorder %s628_s14, 1  ;;  %p90_p7 = scmp.eq.s32.totalorder %s87_s20, 0 }
   0xb   : > { %p696_p8 = por %p109_p5, %p108_p3  ;;  %p155_p9 = scmp.lt.s32.totalorder %s628_s14, 3 }
   0xc   : > { %s702_s22 = scalar_select %p90_p7, %s616_s11, %s92_s18  }
   0xd   : > { %p156_p10 = pnand %p461_p6, %p155_p9 }
   0xe   : > { %p193_p11 = scmp.lt.s32.totalorder (!%p156_p10), %s620_s12, 1  ;;  %s630_s3 = smov (!%p156_p10), 127  }
   0xf   : > { %159 = sbr.rel (%p156_p10) target bundleno = 171 (0xab), region = 28  ;;  %s189_s4 = sand.u32 (!%p156_p10), 1, %s612_s10  }
  0x10   : > { %s462_s5 = sshll.u32 (!%p156_p10), %s189_s4, 5  ;;  %s492_s8 = sshll.u32 (!%p156_p10), %s620_s12, 9 }
  0x11   : > { %s191_s6 = scalar_lea.vmem (!%p156_p10), [#allocation2], %s462_s5  ;;  %s735_s18 = scalar_lea.hbm (!%p156_p10), %s786_s2, %s492_s8 }
  0x12   : > { %s354_s7 = sshll.u32 (!%p156_p10), %s191_s6, 4  ;;  %s730_s7 = int_to_ptr.vmem [resolvable:$true] %s354_s7 }
  0x13   : > { %s552_s20 = scalar_lea.vmem (!%p156_p10), %s730_s7, 512 }
  0x14   : > { %s194_s23 = scalar_select %p193_p11, %s620_s12, 1  ;;  %vm333_vm0 = vcmask 64512  }
  0x15   : > { %s739_s12 = scalar_lea.sflag [#allocation3], %s189_s4  ;;  %p553_p12 = scmp.ne.s32.totalorder %s730_s7, %s552_s20 }
  0x16   : > { %s493_s24 = smul.u32 96, %s194_s23  ;;  %s631_s23 = smov [#allocation2]  }
  0x17   : > { %p554_p13 = pnand %p553_p12, %p689_p4 }
  0x18   : > { %s201_s27 = scalar_lea.vmem %s784_s0, %s493_s24  ;;  %s712_s30 = scalar_lea.vmem %s785_s1, %s493_s24 }
  0x19   : > { %v466_v0 = vld [vmem:[%s201_s27 + $0x30] ss:$2 sm:$0xff]  ;;  %v470_v1 = vld [vmem:[%s201_s27 + $0x31] ss:$2 sm:$0xff]  ;;  %v215_v6 = vld [vmem:[%s201_s27] ss:$2 sm:$0xff]  ;;  %p555_p0 = pneg %p554_p13 }
  0x1a   : > { %v474_v2 = vld [vmem:[%s201_s27 + $0x32] ss:$2 sm:$0xff]  ;;  %v224_v3 = vmul.f32 0.25, %v466_v0  ;;  %v236_v4 = vmul.f32 0.5, %v470_v1  ;;  %v222_v7 = vmul.f32 0.25, %v215_v6  ;;  %s556_s24 = sshll.u32 %s631_s23, 4  ;;  %s557_s24 = int_to_ptr.vmem [resolvable:$false] %s556_s24 }
  0x1b   : > { %v252_v5 = vmul.f32 0.25, %v474_v2  ;;  %v468_v8 = vld [vmem:[%s201_s27 + $0x1] ss:$2 sm:$0xff]  ;;  %v472_v9 = vld [vmem:[%s201_s27 + $0x2] ss:$2 sm:$0xff]  ;;  %s558_s25 = scalar_lea.vmem %s557_s24, 1024  ;;  %p559_p1 = scmp.lt.s32.totalorder %s730_s7, %s557_s24 }
  0x1c   : > { %v240_v10 = vadd.f32 %v236_v4, %v224_v3  ;;  %v234_v11 = vmul.f32 0.5, %v468_v8  ;;  %v250_v12 = vmul.f32 0.25, %v472_v9  ;;  %v467_v13 = vld [vmem:[%s201_s27 + $0x48] ss:$2 sm:$0xff]  ;;  %v471_v14 = vld [vmem:[%s201_s27 + $0x49] ss:$2 sm:$0xff]  ;;  %p560_p2 = scmp.lt.s32.totalorder %s558_s25, %s552_s20 }
  0x1d   : > { %v225_v15 = vmul.f32 0.25, %v467_v13  ;;  %v237_v16 = vmul.f32 0.5, %v471_v14  ;;  %v475_v17 = vld [vmem:[%s201_s27 + $0x4a] ss:$2 sm:$0xff]  ;;  %v469_v23 = vld [vmem:[%s201_s27 + $0x19] ss:$2 sm:$0xff] }
  0x1e   : > { %v465_v18 = vld [vmem:[%s201_s27 + $0x18] ss:$2 sm:$0xff]  ;;  %v256_v19 = vadd.f32 %v252_v5, %v240_v10  ;;  %v238_v20 = vadd.f32 %v234_v11, %v222_v7  ;;  %v253_v21 = vmul.f32 0.25, %v475_v17  ;;  %v235_v26 = vmul.f32 0.5, %v469_v23  ;;  %v481_v29 = vld [vmem:[%s712_s30 + $0x31] ss:$2 sm:$0xff]  ;;  %p561_p3 = por %p560_p2, %p559_p1 }
  0x1f   : > { %v223_v22 = vmul.f32 0.25, %v465_v18  ;;  %v473_v24 = vld [vmem:[%s201_s27 + $0x1a] ss:$2 sm:$0xff]  ;;  %v241_v25 = vadd.f32 %v237_v16, %v225_v15  ;;  %v279_v33 = vmul.f32 0.5, %v481_v29  ;;  %v479_v39 = vld [vmem:[%s712_s30 + $0x1] ss:$2 sm:$0xff] }
  0x20   : > { %v251_v27 = vmul.f32 0.25, %v473_v24  ;;  %v477_v28 = vld [vmem:[%s712_s30 + $0x30] ss:$2 sm:$0xff]  ;;  %v303_v30 = vmul.f32 0.25, %v256_v19  ;;  %v254_v31 = vadd.f32 %v250_v12, %v238_v20  ;;  %v258_v38 = vld [vmem:[%s712_s30] ss:$2 sm:$0xff]  ;;  %p562_p5 = pnand %p561_p3, %p555_p0 }
  0x21   : > { %v267_v32 = vmul.f32 0.25, %v477_v28  ;;  %v485_v34 = vld [vmem:[%s712_s30 + $0x32] ss:$2 sm:$0xff]  ;;  %v257_v35 = vadd.f32 %v253_v21, %v241_v25  ;;  %v239_v36 = vadd.f32 %v235_v26, %v223_v22  ;;  %v265_v42 = vmul.f32 0.25, %v258_v38  ;;  %v483_v44 = vld [vmem:[%s712_s30 + $0x2] ss:$2 sm:$0xff] }
  0x22   : > { %v295_v37 = vmul.f32 0.25, %v485_v34  ;;  %321 = vrot.lane.b32.xlu1 %v303_v30, %s630_s3  ;;  %v301_v40 = vmul.f32 0.25, %v254_v31  ;;  %v277_v43 = vmul.f32 0.5, %v479_v39  ;;  %v293_v47 = vmul.f32 0.25, %v483_v44  ;;  %v478_v48 = vld [vmem:[%s712_s30 + $0x48] ss:$2 sm:$0xff] }
  0x23   : > { %v283_v41 = vadd.f32 %v279_v33, %v267_v32  ;;  %v304_v45 = vmul.f32 0.25, %v257_v35  ;;  %v255_v46 = vadd.f32 %v251_v27, %v239_v36  ;;  %v482_v49 = vld [vmem:[%s712_s30 + $0x49] ss:$2 sm:$0xff]  ;;  %v268_v52 = vmul.f32 0.25, %v478_v48  ;;  %v486_v54 = vld [vmem:[%s712_s30 + $0x4a] ss:$2 sm:$0xff] }
  0x24   : > { %317 = vrot.lane.b32.xlu0 %v301_v40, %s630_s3  ;;  %v281_v51 = vadd.f32 %v277_v43, %v265_v42  ;;  %v280_v53 = vmul.f32 0.5, %v482_v49  ;;  %v476_v55 = vld [vmem:[%s712_s30 + $0x18] ss:$2 sm:$0xff]  ;;  %v296_v57 = vmul.f32 0.25, %v486_v54  ;;  %v480_v59 = vld [vmem:[%s712_s30 + $0x19] ss:$2 sm:$0xff] }
  0x25   : > { %v299_v50 = vadd.f32 %v295_v37, %v283_v41  ;;  %v302_v56 = vmul.f32 0.25, %v255_v46  ;;  %v266_v58 = vmul.f32 0.25, %v476_v55  ;;  %v278_v63 = vmul.f32 0.5, %v480_v59  ;;  %v484_v0 = vld [vmem:[%s712_s30 + $0x1a] ss:$2 sm:$0xff] }
  0x26   : > { %323 = vrot.lane.b32.xlu1 %v304_v45, %s630_s3  ;;  %v297_v61 = vadd.f32 %v293_v47, %v281_v51  ;;  %v284_v62 = vadd.f32 %v280_v53, %v268_v52  ;;  %v294_v1 = vmul.f32 0.25, %v484_v0 }
  0x27   : > { %v307_v60 = vmul.f32 0.5, %v299_v50  ;;  %v282_v5 = vadd.f32 %v278_v63, %v266_v58 }
  0x28   : > { %319 = vrot.lane.b32.xlu0 %v302_v56, %s630_s3  ;;  %v305_v3 = vmul.f32 0.5, %v297_v61  ;;  %v300_v4 = vadd.f32 %v296_v57, %v284_v62 }
  0x29   : > { %v311_v2 = vadd.f32 %v307_v60, %v303_v30  ;;  %v298_v8 = vadd.f32 %v294_v1, %v282_v5 }
  0x2a   : > { %v309_v6 = vadd.f32 %v305_v3, %v301_v40  ;;  %v308_v7 = vmul.f32 0.5, %v300_v4 }
  0x2b   : > { %v306_v10 = vmul.f32 0.5, %v298_v8 }
  0x2c   : > { %v312_v9 = vadd.f32 %v308_v7, %v304_v45 }
  0x2d   : > { %v310_v11 = vadd.f32 %v306_v10, %v302_v56 }
  0x94   : > { %v322_v12 = vpop.permute.xlu1 %321 }
  0x95   : > { %v331_v13 = vadd.f32 %v322_v12, %v311_v2 }
  0x96   : > { %v318_v14 = vpop.permute.xlu0 %317 }
  0x97   : > { %336 = vst.msk [vmem:[%s191_s6 + $0x10] sm:$0xff] %vm333_vm0, %v331_v13  ;;  %v329_v15 = vadd.f32 %v318_v14, %v309_v6 }
  0x98   : > { %v324_v16 = vpop.permute.xlu1 %323 }
  0x99   : > { %334 = vst.msk [vmem:[%s191_s6] sm:$0xff] %vm333_vm0, %v329_v15  ;;  %v332_v17 = vadd.f32 %v324_v16, %v312_v9 }
  0x9a   : > { %v320_v18 = vpop.permute.xlu0 %319 }
  0x9b   : > { %337 = vst.msk [vmem:[%s191_s6 + $0x18] sm:$0xff] %vm333_vm0, %v332_v17  ;;  %v330_v19 = vadd.f32 %v320_v18, %v310_v11 }
  0x9d   : > { %335 = vst.msk [vmem:[%s191_s6 + $0x8] sm:$0xff] %vm333_vm0, %v330_v19 }
  0x9e   : > { %565 = shalt.err (!%p562_p5)
}
  0x9f   : > { %s566_s26 = scalar_lea.hbm %s735_s18, 512  ;;  %s570_s29 = scalar_lea.hbm %s786_s2, 1024 }
  0xa0   : > { %p567_p6 = scmp.ne.s32.totalorder %s735_s18, %s566_s26  ;;  %p571_p10 = scmp.lt.s32.totalorder %s735_s18, %s786_s2 }
  0xa1   : > { %p572_p11 = scmp.lt.s32.totalorder %s570_s29, %s566_s26 }
  0xa2   : > { %p568_p7 = pnand %p567_p6, %p689_p4 }
  0xa3   : > { %p573_p12 = por %p572_p11, %p571_p10 }
  0xa4   : > { %p569_p9 = pneg %p568_p7 }
  0xa6   : > { %p574_p13 = pnand %p573_p12, %p569_p9 }
  0xa8   : > { %577 = shalt.err (!%p574_p13)
}
  0xa9   : > { %s632_s4 = smov 128   ;;  %s633_s5 = smov 8  }
  0xaa   : > { %494 = dma.vmem_to_hbm [thread:$0]  (%p689_p4), %s730_s7, 512, %s735_s18, %s739_s12, %s632_s4, %s632_s4, %s633_s5  }
  0xab PF: > { %p500_p0 = scmp.ge.s32.totalorder %s628_s14, 2  ;;  %s369_s6 = sand.u32 1, %s608_s9  }
  0xac   : > { %s370_s8 = scalar_lea.sflag [#allocation3], %s369_s6 }
  0xad   : > { %p497_p1 = pnand %p500_p0, %p696_p8 }
  0xaf   : > { %p498_p2 = pneg %p497_p1 }
  0xb1   : > { %603 = dma.done.wait (%p498_p2), %s370_s8, 512  }
  0xb2   : > { %605 = vsyncadd (%p498_p2), %s370_s8, 4294966784  ;;  %s15_s14 = sadd.s32 1, %s628_s14   ;;  %s789_s9 = smov %s612_s10 }
  0xb3   : > { %p12_p3 = scmp.ge.s32.totalorder %s15_s14, 4   ;;  %s790_s10 = smov %s616_s11 }
  0xb4   : > { %s791_s11 = smov %s702_s22  ;;  %s792_s12 = smov %s624_s13 }
  0xb5   : > { %s793_s13 = smov %s795_s17  ;;  %14 = sbr.rel (!%p12_p3) target bundleno = 4 (0x4), region = 88 }
  0xba   :  { %375 = vsyncpa [#allocation3], 1 }
  0xbb   :  { %377 = vsyncpa [#allocation3 + $0x1], 1 }

</bundles_post_ra>
